<compile_context>
chip_gen: v7x
topology: tpu7x:2x2x1
jax: 0.10.0
libtpu: 0.0.40
codegen_flags: <defaults>
</compile_context>

<pallas_src>
import math

import jax
import jax.numpy as jnp
from jax.experimental import pallas as pl
from jax.experimental.pallas import tpu as pltpu


_GELU_C = math.sqrt(2.0 / math.pi)


def _gelu_tanh(x):
    # Matches torch.nn.GELU(approximate='tanh').
    return 0.5 * x * (1.0 + jnp.tanh(_GELU_C * (x + 0.044715 * x * x * x)))


def _round_up(a, b):
    return ((a + b - 1) // b) * b


def _tpu_vmem_capacity_bytes():
    """Per-TensorCore VMEM capacity (bytes), generation-aware with safe fallback."""
    try:
        cap = int(getattr(pltpu.get_tpu_info(), "vmem_capacity_bytes"))
        if cap > 0:
            return cap
    except Exception:
        pass
    try:
        kind = jax.devices()[0].device_kind.lower()
    except Exception:
        kind = ""
    if "v7" in kind:
        return 64 << 20
    if "v4" in kind or "v5" in kind or "v6" in kind:
        return 128 << 20
    return 64 << 20  # conservative default for unknown generations


def _mxu_granularity():
    """Preferred tile granularity for MXU-facing dims (128 on <=v5, 256 on v6e/v7x)."""
    try:
        kind = jax.devices()[0].device_kind.lower()
    except Exception:
        return 256
    if "v2" in kind or "v3" in kind or "v4" in kind or "v5" in kind:
        return 128
    return 256


# ----------------------------- kernels --------------------------------------


def _mlp_kernel_resident(x_ref, wfc_ref, bfc_ref, wproj_ref, bproj_ref, o_ref):
    # Full hidden dim per step: weights live in VMEM for the whole kernel,
    # no accumulator scratch, output written once per row tile.
    h = jnp.dot(x_ref[...], wfc_ref[...], preferred_element_type=jnp.float32)
    h = _gelu_tanh(h + bfc_ref[...].astype(jnp.float32))
    out = jnp.dot(h.astype(wproj_ref.dtype), wproj_ref[...],
                  preferred_element_type=jnp.float32)
    o_ref[...] = (out + bproj_ref[...].astype(jnp.float32)).astype(o_ref.dtype)


def _mlp_kernel_slab(x_ref, wfc_ref, bfc_ref, wproj_ref, bproj_ref, o_ref, acc_ref):
    # Hidden dim tiled along an "arbitrary" reduction axis; f32 VMEM accumulator
    # lives across the k axis, b_proj add + downcast + store only on the last slab.
    k = pl.program_id(1)

    @pl.when(k == 0)
    def _():
        acc_ref[...] = jnp.zeros_like(acc_ref)

    h = jnp.dot(x_ref[...], wfc_ref[...], preferred_element_type=jnp.float32)
    h = _gelu_tanh(h + bfc_ref[...].astype(jnp.float32))
    acc_ref[...] += jnp.dot(h.astype(wproj_ref.dtype), wproj_ref[...],
                            preferred_element_type=jnp.float32)

    @pl.when(k == pl.num_programs(1) - 1)
    def _():
        o_ref[...] = (acc_ref[...]
                      + bproj_ref[...].astype(jnp.float32)).astype(o_ref.dtype)


# ----------------------------- wrapper ---------------------------------------


def mlp_forward(x, w_fc, b_fc, w_proj, b_proj, *, row_tile=None, hidden_tile=None,
                cast_operands_to_bf16=False):
    """x: (B, T, C); w_fc: (C, 4C); w_proj: (4C, C). Returns (B, T, C)."""
    B, T, C = x.shape
    H = w_fc.shape[1]
    assert w_fc.shape == (C, H) and w_proj.shape == (H, C)
    assert b_fc.shape == (H,) and b_proj.shape == (C,)

    if cast_operands_to_bf16:
        # Optional mixed-precision mode: bf16 MXU operands (full MXU rate, half
        # the HBM/VMEM weight footprint); accumulation stays f32 in the kernel.
        x = x.astype(jnp.bfloat16)
        w_fc = w_fc.astype(jnp.bfloat16)
        w_proj = w_proj.astype(jnp.bfloat16)
        b_fc = b_fc.astype(jnp.bfloat16)
        b_proj = b_proj.astype(jnp.bfloat16)

    M = B * T
    x2d = x.reshape(M, C)
    x_item = x.dtype.itemsize
    w_item = w_fc.dtype.itemsize
    b_item = b_fc.dtype.itemsize

    vmem_cap = _tpu_vmem_capacity_bytes()
    gran = _mxu_granularity()
    budget = int(vmem_cap * 0.75)  # ~48 MiB on v7x (64 MiB/TC), ~96 MiB on v5e/v6e

    # ---- row tile (generation-aware; big enough to amortize weight traffic) ----
    if row_tile is None:
        target = 512 if gran < 256 else (1024 if M >= 4096 else 512)
        if M <= target:
            tm = _round_up(M, 8)
        elif M <= 2 * target:
            # Exactly two row tiles: keeps both v7x TensorCores busy and
            # minimizes padded rows.
            tm = _round_up((M + 1) // 2, 8)
        else:
            tm = target
    else:
        tm = _round_up(row_tile, 8)
    tm = max(8, min(tm, _round_up(M, 8)))

    # ---- hidden tile: resident weights if they fit, else MXU-shaped slabs -----
    def _resident_bytes(tm_):
        return (2 * 2 * C * H * w_item            # W_fc + W_proj (double-buffer conservative)
                + 2 * 2 * tm_ * C * x_item        # x + out tiles, double-buffered
                + 2 * (H + C) * max(b_item, 4)    # biases (tiny)
                + tm_ * H * 4                     # f32 GELU intermediate
                + tm_ * C * 4)                    # f32 pre-store intermediate

    def _slab_bytes(tm_, th_, wbuf):
        return (wbuf * (C * th_ + th_ * C) * w_item
                + 2 * 2 * tm_ * C * x_item
                + 2 * (th_ + C) * max(b_item, 4)
                + tm_ * C * 4                     # f32 accumulator scratch
                + tm_ * th_ * 4                   # f32 GELU intermediate
                + tm_ * C * 4)

    if hidden_tile is not None:
        th = hidden_tile
        assert H % th == 0 and (th == H or th % 128 == 0)
    elif _resident_bytes(tm) <= budget:
        th = H
    else:
        # Slab-tile the hidden dim; keep slabs multiples of 256 on v6e/v7x
        # (2x256 MXU), 128 on v5e, and dividing H.
        target_th = 1024 if gran >= 256 else 512
        th = None
        t = (min(target_th, H) // gran) * gran
        while t >= gran:
            if H % t == 0:
                th = t
                break
            t -= gran
        if th is None:
            t = (min(target_th, H) // 128) * 128
            while t >= 128:
                if H % t == 0:
                    th = t
                    break
                t -= 128
        if th is None:
            th = H
        # If still over budget (huge C / f32 weights on a 64 MiB-per-TC part),
        # shrink the row tile.
        if row_tile is None and th < H:
            while _slab_bytes(tm, th, 2) > budget and tm > 64:
                tm = max(64, _round_up(tm // 2, 8))

    M_pad = _round_up(M, tm)
    if M_pad != M:
        x2d = jnp.pad(x2d, ((0, M_pad - M), (0, 0)))

    b_fc2 = b_fc.reshape(1, H)
    b_proj2 = b_proj.reshape(1, C)

    resident = (th == H)
    k_steps = 1 if resident else H // th

    # Optional deeper buffering of the weight slabs (hides DMA jitter over the
    # short k loop) — only when slab-tiled, enough k steps, and VMEM allows.
    weight_buffers = 2
    if (not resident) and hidden_tile is None and k_steps >= 4:
        if _slab_bytes(tm, th, 3) <= budget:
            weight_buffers = 3

    est = _resident_bytes(tm) if resident else _slab_bytes(tm, th, weight_buffers)
    vmem_limit = int(min(est + (16 << 20), int(vmem_cap * 0.9)))

    grid = (M_pad // tm,) if resident else (M_pad // tm, k_steps)

    # Cost estimate: account for weight re-reads in the slab path (weights are
    # re-streamed once per row tile when the k axis cycles).
    weight_bytes = (w_fc.size + w_proj.size) * w_item
    weight_reads = grid[0] if (not resident and grid[0] > 1) else 1
    cost = pl.CostEstimate(
        flops=4 * M_pad * C * H,                 # two matmuls
        transcendentals=M_pad * H,               # tanh in GELU
        bytes_accessed=int(x2d.size * x_item
                           + weight_reads * weight_bytes
                           + (b_fc.size + b_proj.size) * b_item
                           + M_pad * C * x_item),
    )

    if resident:
        out2d = pl.pallas_call(
            _mlp_kernel_resident,
            out_shape=jax.ShapeDtypeStruct((M_pad, C), x.dtype),
            grid_spec=pltpu.PrefetchScalarGridSpec(
                num_scalar_prefetch=0,
                grid=grid,
                in_specs=[
                    pl.BlockSpec((tm, C), lambda i: (i, 0)),   # x row tile
                    pl.BlockSpec((C, H), lambda i: (0, 0)),    # W_fc (resident)
                    pl.BlockSpec((1, H), lambda i: (0, 0)),    # b_fc
                    pl.BlockSpec((H, C), lambda i: (0, 0)),    # W_proj (resident)
                    pl.BlockSpec((1, C), lambda i: (0, 0)),    # b_proj
                ],
                out_specs=pl.BlockSpec((tm, C), lambda i: (i, 0)),
            ),
            compiler_params=pltpu.CompilerParams(
                dimension_semantics=("parallel",),
                vmem_limit_bytes=vmem_limit,
            ),
            cost_estimate=cost,
        )(x2d, w_fc, b_fc2, w_proj, b_proj2)
    else:
        def _wspec(shape, imap):
            if weight_buffers != 2:
                return pl.BlockSpec(shape, imap,
                                    pipeline_mode=pl.Buffered(weight_buffers))
            return pl.BlockSpec(shape, imap)

        out2d = pl.pallas_call(
            _mlp_kernel_slab,
            out_shape=jax.ShapeDtypeStruct((M_pad, C), x.dtype),
            grid_spec=pltpu.PrefetchScalarGridSpec(
                num_scalar_prefetch=0,
                grid=grid,
                in_specs=[
                    pl.BlockSpec((tm, C), lambda i, k: (i, 0)),   # x row tile
                    _wspec((C, th), lambda i, k: (0, k)),         # W_fc hidden slab
                    pl.BlockSpec((1, th), lambda i, k: (0, k)),   # b_fc hidden slab
                    _wspec((th, C), lambda i, k: (k, 0)),         # W_proj hidden slab
                    pl.BlockSpec((1, C), lambda i, k: (0, 0)),    # b_proj
                ],
                out_specs=pl.BlockSpec((tm, C), lambda i, k: (i, 0)),
                scratch_shapes=[pltpu.VMEM((tm, C), jnp.float32)],
            ),
            compiler_params=pltpu.CompilerParams(
                dimension_semantics=("parallel", "arbitrary"),
                vmem_limit_bytes=vmem_limit,
            ),
            cost_estimate=cost,
        )(x2d, w_fc, b_fc2, w_proj, b_proj2)

    if M_pad != M:
        out2d = out2d[:M]
    return out2d.reshape(B, T, C)


def _reference_mlp(x, w_fc, b_fc, w_proj, b_proj):
    hi = jax.lax.Precision.HIGHEST
    h = jnp.dot(x, w_fc, precision=hi) + b_fc
    h = _gelu_tanh(h)
    return jnp.dot(h, w_proj, precision=hi) + b_proj


if __name__ == "__main__":
    # Small GPT-2-style config with lane-dense feature dims (C, 4C multiples of 128).
    B, T, C = 2, 12, 128
    H = 4 * C

    key = jax.random.PRNGKey(0)
    kx, k1, k2, k3, k4 = jax.random.split(key, 5)

    x = jax.random.normal(kx, (B, T, C), dtype=jnp.float32)
    w_fc = jax.random.normal(k1, (C, H), dtype=jnp.float32) * (1.0 / math.sqrt(C))
    b_fc = jax.random.normal(k2, (H,), dtype=jnp.float32) * 0.02
    w_proj = jax.random.normal(k3, (H, C), dtype=jnp.float32) * (1.0 / math.sqrt(H))
    b_proj = jax.random.normal(k4, (C,), dtype=jnp.float32) * 0.02

    ref = _reference_mlp(x, w_fc, b_fc, w_proj, b_proj)

    # Default auto-tiling: weights fit the VMEM budget -> resident-weights path
    # (1-D grid, no accumulator scratch).
    out_d = jax.block_until_ready(mlp_forward(x, w_fc, b_fc, w_proj, b_proj))
    assert out_d.shape == (B, T, C)
    assert jnp.allclose(out_d, ref, atol=2e-3, rtol=2e-3), "resident-path mismatch"

    # Explicit small tiles: exercises the hidden-slab path (2-D grid), the f32
    # accumulator, and row padding (M=24 -> M_pad=32).
    out_s = jax.block_until_ready(
        mlp_forward(x, w_fc, b_fc, w_proj, b_proj, row_tile=16, hidden_tile=256))
    assert jnp.allclose(out_s, ref, atol=2e-3, rtol=2e-3), "slab-path mismatch"

    # Mixed-precision mode: bf16 MXU operands, f32 accumulation in the kernel.
    out_bf16 = jax.block_until_ready(
        mlp_forward(x, w_fc, b_fc, w_proj, b_proj, cast_operands_to_bf16=True))
    assert jnp.allclose(out_bf16.astype(jnp.float32), ref, atol=1e-1, rtol=1e-1), \
        "bf16 mismatch vs reference"

    print("KERNEL_OK")
</pallas_src>

<mosaic_0001>
module attributes {stable_mosaic.version = 11 : i64} {
  func.func @_mlp_kernel_resident(%arg0: i32, %arg1: memref<24x128xf32, #tpu.memory_space<vmem>>, %arg2: memref<128x512xf32, #tpu.memory_space<vmem>>, %arg3: memref<1x512xf32, #tpu.memory_space<vmem>>, %arg4: memref<512x128xf32, #tpu.memory_space<vmem>>, %arg5: memref<1x128xf32, #tpu.memory_space<vmem>>, %arg6: memref<24x128xf32, #tpu.memory_space<vmem>>) attributes {dimension_semantics = [#tpu.dimension_semantics<parallel>], iteration_bounds = array<i64: 1>, scalar_prefetch = 0 : i64, scratch_operands = 0 : i64, tpu.core_type = #tpu.core_type<tc>, window_params = [{transform_indices = @transform_0, window_bounds = array<i64: 24, 128>}, {pipeline_mode = #tpu.pipeline_mode<synchronous>, transform_indices = @transform_1, window_bounds = array<i64: 128, 512>}, {pipeline_mode = #tpu.pipeline_mode<synchronous>, transform_indices = @transform_2, window_bounds = array<i64: 1, 512>}, {pipeline_mode = #tpu.pipeline_mode<synchronous>, transform_indices = @transform_3, window_bounds = array<i64: 512, 128>}, {pipeline_mode = #tpu.pipeline_mode<synchronous>, transform_indices = @transform_4, window_bounds = array<i64: 1, 128>}, {transform_indices = @transform_5, window_bounds = array<i64: 24, 128>}]} {
    %c0 = arith.constant 0 : index
    %c0_0 = arith.constant 0 : index
    %0 = vector.load %arg1[%c0, %c0_0] : memref<24x128xf32, #tpu.memory_space<vmem>>, vector<24x128xf32>
    %c0_1 = arith.constant 0 : index
    %c0_2 = arith.constant 0 : index
    %1 = vector.load %arg2[%c0_1, %c0_2] : memref<128x512xf32, #tpu.memory_space<vmem>>, vector<128x512xf32>
    %cst = arith.constant dense<0.000000e+00> : vector<24x512xf32>
    %2 = tpu.matmul %0, %1, %cst {dimension_numbers = #tpu.dot_dimension_numbers<[1], [0], [0], [1], [0, 0, 1, 1], [], []>} : vector<24x128xf32>, vector<128x512xf32>, vector<24x512xf32> -> vector<24x512xf32>
    %c0_3 = arith.constant 0 : index
    %c0_4 = arith.constant 0 : index
    %3 = vector.load %arg3[%c0_3, %c0_4] : memref<1x512xf32, #tpu.memory_space<vmem>>, vector<1x512xf32>
    %4 = vector.broadcast %3 : vector<1x512xf32> to vector<24x512xf32>
    %5 = arith.addf %2, %4 : vector<24x512xf32>
    %cst_5 = arith.constant 5.000000e-01 : f32
    %6 = vector.broadcast %cst_5 : f32 to vector<24x512xf32>
    %7 = arith.mulf %6, %5 : vector<24x512xf32>
    %cst_6 = arith.constant 4.471500e-02 : f32
    %8 = vector.broadcast %cst_6 : f32 to vector<24x512xf32>
    %9 = arith.mulf %8, %5 : vector<24x512xf32>
    %10 = arith.mulf %9, %5 : vector<24x512xf32>
    %11 = arith.mulf %10, %5 : vector<24x512xf32>
    %12 = arith.addf %5, %11 : vector<24x512xf32>
    %cst_7 = arith.constant 0.797884583 : f32
    %13 = vector.broadcast %cst_7 : f32 to vector<24x512xf32>
    %14 = arith.mulf %13, %12 : vector<24x512xf32>
    %15 = math.tanh %14 : vector<24x512xf32>
    %cst_8 = arith.constant 1.000000e+00 : f32
    %16 = vector.broadcast %cst_8 : f32 to vector<24x512xf32>
    %17 = arith.addf %16, %15 : vector<24x512xf32>
    %18 = arith.mulf %7, %17 : vector<24x512xf32>
    %c0_9 = arith.constant 0 : index
    %c0_10 = arith.constant 0 : index
    %19 = vector.load %arg4[%c0_9, %c0_10] : memref<512x128xf32, #tpu.memory_space<vmem>>, vector<512x128xf32>
    %cst_11 = arith.constant dense<0.000000e+00> : vector<24x128xf32>
    %20 = tpu.matmul %18, %19, %cst_11 {dimension_numbers = #tpu.dot_dimension_numbers<[1], [0], [0], [1], [0, 0, 1, 1], [], []>} : vector<24x512xf32>, vector<512x128xf32>, vector<24x128xf32> -> vector<24x128xf32>
    %c0_12 = arith.constant 0 : index
    %c0_13 = arith.constant 0 : index
    %21 = vector.load %arg5[%c0_12, %c0_13] : memref<1x128xf32, #tpu.memory_space<vmem>>, vector<1x128xf32>
    %22 = vector.broadcast %21 : vector<1x128xf32> to vector<24x128xf32>
    %23 = arith.addf %20, %22 : vector<24x128xf32>
    %c0_14 = arith.constant 0 : index
    %c0_15 = arith.constant 0 : index
    %24 = vector.load %arg6[%c0_14, %c0_15] : memref<24x128xf32, #tpu.memory_space<vmem>>, vector<24x128xf32>
    tpu.vector_store %arg6[%c0_14, %c0_15], %23 {strides = array<i32>} : memref<24x128xf32, #tpu.memory_space<vmem>>, vector<24x128xf32>,
    return
  }
  func.func @transform_0(%arg0: i32) -> (i32, i32) {
    %c0_i32 = arith.constant 0 : i32
    %c0_i32_0 = arith.constant 0 : i32
    return %arg0, %c0_i32 : i32, i32
  }
  func.func @transform_1(%arg0: i32) -> (i32, i32) {
    %c0_i32 = arith.constant 0 : i32
    %c0_i32_0 = arith.constant 0 : i32
    %c0_i32_1 = arith.constant 0 : i32
    return %c0_i32, %c0_i32_0 : i32, i32
  }
  func.func @transform_2(%arg0: i32) -> (i32, i32) {
    %c0_i32 = arith.constant 0 : i32
    %c0_i32_0 = arith.constant 0 : i32
    %c0_i32_1 = arith.constant 0 : i32
    return %c0_i32, %c0_i32_0 : i32, i32
  }
  func.func @transform_3(%arg0: i32) -> (i32, i32) {
    %c0_i32 = arith.constant 0 : i32
    %c0_i32_0 = arith.constant 0 : i32
    %c0_i32_1 = arith.constant 0 : i32
    return %c0_i32, %c0_i32_0 : i32, i32
  }
  func.func @transform_4(%arg0: i32) -> (i32, i32) {
    %c0_i32 = arith.constant 0 : i32
    %c0_i32_0 = arith.constant 0 : i32
    %c0_i32_1 = arith.constant 0 : i32
    return %c0_i32, %c0_i32_0 : i32, i32
  }
  func.func @transform_5(%arg0: i32) -> (i32, i32) {
    %c0_i32 = arith.constant 0 : i32
    %c0_i32_0 = arith.constant 0 : i32
    return %arg0, %c0_i32 : i32, i32
  }
}

</mosaic_0001>

<bundles_post_ra>
// kernel: tpu_custom_call.1
= control target key start
LH: loop header
LB: loop body
LE: loop exit
PB: predicated region body
PF: predicated region fallthrough
CT: control target
= control target key end

     0   :  { %10 = vsyncpa [#allocation3], 0  ;;  %s1207_s0 = inlined_call_operand.hbm [shape: f32[24,128], index: 0, kind: input, shape index: {}]   ;;  %s1208_s1 = inlined_call_operand.hbm [shape: f32[128,512], index: 1, kind: input, shape index: {}]   ;;  %s1209_s2 = inlined_call_operand.vmem [shape: f32[1,512], index: 2, kind: input, shape index: {}]   ;;  %s1210_s3 = inlined_call_operand.hbm [shape: f32[512,128], index: 3, kind: input, shape index: {}]   ;;  %s1211_s4 = inlined_call_operand.vmem [shape: f32[1,128], index: 4, kind: input, shape index: {}]   ;;  %s1212_s5 = inlined_call_operand.hbm [shape: f32[24,128], index: 5, kind: output, shape index: {}]  }
   0x1   :  { %11 = vsyncpa [#allocation6], 0 }
   0x2   :  { %12 = vsyncpa [#allocation4], 0  ;;  %s1015_s18 = smov [#allocation5]   ;;  %s921_s22 = scalar_lea.hbm %s1208_s1, 8192 }
   0x3   :  { %s30_s19 = sshll.u32 %s1015_s18, 4  ;;  %p922_p0 = scmp.ne.s32.totalorder %s1208_s1, %s921_s22  ;;  %s31_s19 = int_to_ptr.vmem [resolvable:$true] %s30_s19 }
   0x4   :  { %p925_p1 = scmp.lt.u32.totalorder %s921_s22, %s1208_s1 }
   0x6   :  { %p927_p2 = pnand %p925_p1, %p922_p0 }
   0x8   :  { %930 = shalt.err (!%p927_p2)
}
   0x9   :  { %s931_s27 = scalar_lea.vmem %s31_s19, 8192  ;;  %p936_p4 = scmp.lt.s32.totalorder %s31_s19, %s31_s19 }
   0xa   :  { %p932_p3 = scmp.ne.s32.totalorder %s31_s19, %s931_s27  ;;  %p937_p5 = scmp.lt.s32.totalorder %s931_s27, %s931_s27 }
   0xc   :  { %p938_p6 = por %p937_p5, %p936_p4 }
   0xe   :  { %p939_p7 = pnand %p938_p6, %p932_p3 }
  0x10   :  { %942 = shalt.err (!%p939_p7)
}
  0x11   :  { %s1016_s28 = smov 512   ;;  %s1017_s29 = smov 32  }
  0x12   :  { %36 = dma.hbm_to_vmem [thread:$0]  %s1208_s1, 8192, %s31_s19, [#allocation6], %s1016_s28, %s1016_s28, %s1017_s29  }
  0x13   :  { %s1018_s7 = smov [#allocation2]   ;;  %s943_s11 = scalar_lea.hbm %s1207_s0, 384 }
  0x14   :  { %s18_s8 = sshll.u32 %s1018_s7, 4  ;;  %p944_p8 = scmp.ne.s32.totalorder %s1207_s0, %s943_s11  ;;  %s19_s8 = int_to_ptr.vmem [resolvable:$true] %s18_s8 }
  0x15   :  { %p947_p9 = scmp.lt.u32.totalorder %s943_s11, %s1207_s0 }
  0x17   :  { %p949_p10 = pnand %p947_p9, %p944_p8 }
  0x19   :  { %952 = shalt.err (!%p949_p10)
}
  0x1a   :  { %s953_s16 = scalar_lea.vmem %s19_s8, 384  ;;  %p958_p12 = scmp.lt.s32.totalorder %s19_s8, %s19_s8 }
  0x1b   :  { %p954_p11 = scmp.ne.s32.totalorder %s19_s8, %s953_s16  ;;  %p959_p13 = scmp.lt.s32.totalorder %s953_s16, %s953_s16 }
  0x1d   :  { %p960_p0 = por %p959_p13, %p958_p12 }
  0x1f   :  { %p961_p1 = pnand %p960_p0, %p954_p11 }
  0x21   :  { %964 = shalt.err (!%p961_p1)
}
  0x22   :  { %s1019_s1 = smov 128   ;;  %s1020_s17 = smov 8  }
  0x23   :  { %24 = dma.hbm_to_vmem [thread:$0]  %s1207_s0, 384, %s19_s8, [#allocation3], %s1019_s1, %s1019_s1, %s1020_s17  }
  0x24   :  { %s1021_s20 = smov [#allocation7]   ;;  %s965_s24 = scalar_lea.hbm %s1210_s3, 8192 }
  0x25   :  { %s44_s21 = sshll.u32 %s1021_s20, 4  ;;  %p966_p2 = scmp.ne.s32.totalorder %s1210_s3, %s965_s24  ;;  %s45_s21 = int_to_ptr.vmem [resolvable:$true] %s44_s21 }
  0x26   :  { %p969_p3 = scmp.lt.u32.totalorder %s965_s24, %s1210_s3 }
  0x28   :  { %p971_p4 = pnand %p969_p3, %p966_p2 }
  0x2a   :  { %974 = shalt.err (!%p971_p4)
}
  0x2b   :  { %s975_s29 = scalar_lea.vmem %s45_s21, 8192  ;;  %p980_p6 = scmp.lt.s32.totalorder %s45_s21, %s45_s21 }
  0x2c   :  { %p976_p5 = scmp.ne.s32.totalorder %s45_s21, %s975_s29  ;;  %p981_p7 = scmp.lt.s32.totalorder %s975_s29, %s975_s29 }
  0x2e   :  { %p982_p8 = por %p981_p7, %p980_p6 }
  0x30   :  { %p983_p9 = pnand %p982_p8, %p976_p5 }
  0x32   :  { %986 = shalt.err (!%p983_p9)
}
  0x33   :  { %50 = dma.hbm_to_vmem [thread:$0]  %s1210_s3, 8192, %s45_s21, [#allocation6], %s1019_s1, %s1019_s1, %s1020_s17  }
  0x34   :  { %1009 = dma.done.wait [#allocation3], 384  }
  0x35   :  { %1010 = vsyncadd [#allocation3], 4294966912 }
  0x36   :  { %1011 = dma.done.wait [#allocation6], 16384  }
  0x37   :  { %1012 = vsyncadd [#allocation6], 4294950912  ;;  %v1022_v0 = vmov 0.0   ;;  %v66_v1 = vld [vmem:[#allocation5 + $0x8] sm:$0xff]  ;;  %v68_v3 = vld [vmem:[#allocation5 + $0x18] sm:$0xff] }
  0x38   :  { %215 = vmatprep.mubr.f32.mxu0 %v1022_v0  ;;  %298 = vmatprep.mubr.f32.mxu1 %v1022_v0  ;;  %v70_v2 = vld [vmem:[#allocation5 + $0x28] sm:$0xff]  ;;  %v72_v5 = vld [vmem:[#allocation5 + $0x38] sm:$0xff]  ;;  %v65_v6 = vld [vmem:[#allocation5] sm:$0xff] }
  0x39   :  { %v760_v4 = vpack.c.bf16 %v70_v2, %v66_v1  ;;  %v69_v7 = vld [vmem:[#allocation5 + $0x20] sm:$0xff]  ;;  %v792_v8 = vpack.c.bf16 %v72_v5, %v68_v3  ;;  %v67_v10 = vld [vmem:[#allocation5 + $0x10] sm:$0xff]  ;;  %v74_v12 = vld [vmem:[#allocation5 + $0x48] sm:$0xff] }
  0x3a   :  { %v762_v9 = vpack.c.bf16 %v69_v7, %v65_v6  ;;  %v71_v11 = vld [vmem:[#allocation5 + $0x30] sm:$0xff]  ;;  %v78_v14 = vld [vmem:[#allocation5 + $0x68] sm:$0xff]  ;;  %v76_v15 = vld [vmem:[#allocation5 + $0x58] sm:$0xff] }
  0x3b   :  { %761 = vmatprep.subr.bf16.mxu0 %v760_v4  ;;  %v794_v13 = vpack.c.bf16 %v71_v11, %v67_v10  ;;  %v80_v16 = vld [vmem:[#allocation5 + $0x78] sm:$0xff]  ;;  %793 = vmatprep.subr.bf16.mxu1 %v792_v8  ;;  %v764_v17 = vpack.c.bf16 %v78_v14, %v74_v12  ;;  %v73_v19 = vld [vmem:[#allocation5 + $0x40] sm:$0xff]  ;;  %v75_v21 = vld [vmem:[#allocation5 + $0x50] sm:$0xff] }
  0x3c   :  { %763 = vmatpush1.bf16.msra.mxu0 %v762_v9  ;;  %v796_v18 = vpack.c.bf16 %v80_v16, %v76_v15  ;;  %v77_v20 = vld [vmem:[#allocation5 + $0x60] sm:$0xff]  ;;  %v79_v23 = vld [vmem:[#allocation5 + $0x70] sm:$0xff]  ;;  %v82_v24 = vld [vmem:[#allocation5 + $0x88] sm:$0xff] }
  0x3d   :  { %795 = vmatpush1.bf16.msra.mxu1 %v794_v13  ;;  %v766_v22 = vpack.c.bf16 %v77_v20, %v73_v19  ;;  %v86_v25 = vld [vmem:[#allocation5 + $0xa8] sm:$0xff]  ;;  %765 = vmatprep.subr.bf16.mxu0 %v764_v17  ;;  %v798_v26 = vpack.c.bf16 %v79_v23, %v75_v21  ;;  %v84_v28 = vld [vmem:[#allocation5 + $0x98] sm:$0xff]  ;;  %v81_v30 = vld [vmem:[#allocation5 + $0x80] sm:$0xff] }
  0x3e   :  { %797 = vmatprep.subr.bf16.mxu1 %v796_v18  ;;  %v768_v27 = vpack.c.bf16 %v86_v25, %v82_v24  ;;  %v88_v29 = vld [vmem:[#allocation5 + $0xb8] sm:$0xff]  ;;  %v85_v32 = vld [vmem:[#allocation5 + $0xa0] sm:$0xff]  ;;  %v83_v33 = vld [vmem:[#allocation5 + $0x90] sm:$0xff] }
  0x3f   :  { %v800_v31 = vpack.c.bf16 %v88_v29, %v84_v28  ;;  %v87_v34 = vld [vmem:[#allocation5 + $0xb0] sm:$0xff]  ;;  %v770_v35 = vpack.c.bf16 %v85_v32, %v81_v30  ;;  %v90_v36 = vld [vmem:[#allocation5 + $0xc8] sm:$0xff]  ;;  %v92_v38 = vld [vmem:[#allocation5 + $0xd8] sm:$0xff] }
  0x40   :  { %767 = vmatpush1.bf16.msra.mxu0 %v766_v22  ;;  %v94_v37 = vld [vmem:[#allocation5 + $0xe8] sm:$0xff]  ;;  %v802_v39 = vpack.c.bf16 %v87_v34, %v83_v33  ;;  %v96_v41 = vld [vmem:[#allocation5 + $0xf8] sm:$0xff]  ;;  %v89_v42 = vld [vmem:[#allocation5 + $0xc0] sm:$0xff] }
  0x41   :  { %799 = vmatpush1.bf16.msra.mxu1 %v798_v26  ;;  %769 = vmatprep.subr.bf16.mxu0 %v768_v27  ;;  %v772_v40 = vpack.c.bf16 %v94_v37, %v90_v36  ;;  %v93_v43 = vld [vmem:[#allocation5 + $0xe0] sm:$0xff]  ;;  %v804_v44 = vpack.c.bf16 %v96_v41, %v92_v38  ;;  %v91_v45 = vld [vmem:[#allocation5 + $0xd0] sm:$0xff]  ;;  %v98_v47 = vld [vmem:[#allocation5 + $0x108] sm:$0xff] }
  0x42   :  { %801 = vmatprep.subr.bf16.mxu1 %v800_v31  ;;  %v95_v46 = vld [vmem:[#allocation5 + $0xf0] sm:$0xff]  ;;  %v102_v48 = vld [vmem:[#allocation5 + $0x128] sm:$0xff]  ;;  %v100_v49 = vld [vmem:[#allocation5 + $0x118] sm:$0xff]  ;;  %v774_v51 = vpack.c.bf16 %v93_v43, %v89_v42 }
  0x43   :  { %v104_v50 = vld [vmem:[#allocation5 + $0x138] sm:$0xff]  ;;  %v806_v52 = vpack.c.bf16 %v95_v46, %v91_v45  ;;  %v776_v53 = vpack.c.bf16 %v102_v48, %v98_v47  ;;  %v97_v54 = vld [vmem:[#allocation5 + $0x100] sm:$0xff]  ;;  %v99_v56 = vld [vmem:[#allocation5 + $0x110] sm:$0xff] }
  0x44   :  { %771 = vmatpush1.bf16.msra.mxu0 %v770_v35  ;;  %v101_v55 = vld [vmem:[#allocation5 + $0x120] sm:$0xff]  ;;  %v808_v57 = vpack.c.bf16 %v104_v50, %v100_v49  ;;  %v103_v58 = vld [vmem:[#allocation5 + $0x130] sm:$0xff]  ;;  %v106_v59 = vld [vmem:[#allocation5 + $0x148] sm:$0xff] }
  0x45   :  { %803 = vmatpush1.bf16.msra.mxu1 %v802_v39  ;;  %773 = vmatprep.subr.bf16.mxu0 %v772_v40  ;;  %v110_v60 = vld [vmem:[#allocation5 + $0x168] sm:$0xff]  ;;  %v108_v61 = vld [vmem:[#allocation5 + $0x158] sm:$0xff]  ;;  %v778_v63 = vpack.c.bf16 %v101_v55, %v97_v54  ;;  %v810_v1 = vpack.c.bf16 %v103_v58, %v99_v56  ;;  %v105_v3 = vld [vmem:[#allocation5 + $0x140] sm:$0xff] }
  0x46   :  { %805 = vmatprep.subr.bf16.mxu1 %v804_v44  ;;  %v112_v62 = vld [vmem:[#allocation5 + $0x178] sm:$0xff]  ;;  %v780_v2 = vpack.c.bf16 %v110_v60, %v106_v59  ;;  %v109_v4 = vld [vmem:[#allocation5 + $0x160] sm:$0xff]  ;;  %v107_v5 = vld [vmem:[#allocation5 + $0x150] sm:$0xff] }
  0x47   :  { %v812_v6 = vpack.c.bf16 %v112_v62, %v108_v61  ;;  %v111_v7 = vld [vmem:[#allocation5 + $0x170] sm:$0xff]  ;;  %v114_v8 = vld [vmem:[#allocation5 + $0x188] sm:$0xff]  ;;  %v116_v10 = vld [vmem:[#allocation5 + $0x198] sm:$0xff]  ;;  %v782_v12 = vpack.c.bf16 %v109_v4, %v105_v3 }
  0x48   :  { %775 = vmatpush1.bf16.msra.mxu0 %v774_v51  ;;  %v118_v9 = vld [vmem:[#allocation5 + $0x1a8] sm:$0xff]  ;;  %v120_v11 = vld [vmem:[#allocation5 + $0x1b8] sm:$0xff]  ;;  %v814_v13 = vpack.c.bf16 %v111_v7, %v107_v5  ;;  %v113_v15 = vld [vmem:[#allocation5 + $0x180] sm:$0xff] }
  0x49   :  { %807 = vmatpush1.bf16.msra.mxu1 %v806_v52  ;;  %777 = vmatprep.subr.bf16.mxu0 %v776_v53  ;;  %v784_v14 = vpack.c.bf16 %v118_v9, %v114_v8  ;;  %v117_v16 = vld [vmem:[#allocation5 + $0x1a0] sm:$0xff]  ;;  %v115_v17 = vld [vmem:[#allocation5 + $0x190] sm:$0xff]  ;;  %v816_v18 = vpack.c.bf16 %v120_v11, %v116_v10  ;;  %v122_v20 = vld [vmem:[#allocation5 + $0x1c8] sm:$0xff] }
  0x4a   :  { %809 = vmatprep.subr.bf16.mxu1 %v808_v57  ;;  %v119_v19 = vld [vmem:[#allocation5 + $0x1b0] sm:$0xff]  ;;  %v126_v21 = vld [vmem:[#allocation5 + $0x1e8] sm:$0xff]  ;;  %v124_v22 = vld [vmem:[#allocation5 + $0x1d8] sm:$0xff]  ;;  %v786_v24 = vpack.c.bf16 %v117_v16, %v113_v15 }
  0x4b   :  { %v128_v23 = vld [vmem:[#allocation5 + $0x1f8] sm:$0xff]  ;;  %v818_v25 = vpack.c.bf16 %v119_v19, %v115_v17  ;;  %v788_v26 = vpack.c.bf16 %v126_v21, %v122_v20  ;;  %v121_v27 = vld [vmem:[#allocation5 + $0x1c0] sm:$0xff]  ;;  %v123_v29 = vld [vmem:[#allocation5 + $0x1d0] sm:$0xff] }
  0x4c   :  { %779 = vmatpush1.bf16.msra.mxu0 %v778_v63  ;;  %v125_v28 = vld [vmem:[#allocation5 + $0x1e0] sm:$0xff]  ;;  %v820_v30 = vpack.c.bf16 %v128_v23, %v124_v22  ;;  %v127_v31 = vld [vmem:[#allocation5 + $0x1f0] sm:$0xff]  ;;  %v442_v33 = vld [vmem:[#allocation7 + $0x88] sm:$0xff] }
  0x4d   :  { %811 = vmatpush1.bf16.msra.mxu1 %v810_v1  ;;  %781 = vmatprep.subr.bf16.mxu0 %v780_v2  ;;  %v441_v32 = vld [vmem:[#allocation7 + $0x80] sm:$0xff]  ;;  %v474_v35 = vld [vmem:[#allocation7 + $0x188] sm:$0xff]  ;;  %v790_v36 = vpack.c.bf16 %v125_v28, %v121_v27  ;;  %v822_v37 = vpack.c.bf16 %v127_v31, %v123_v29  ;;  %v63_v47 = vld [vmem:[#allocation2 + $0x8] sm:$0xff] }
  0x4e   :  { %813 = vmatprep.subr.bf16.mxu1 %v812_v6  ;;  %v473_v34 = vld [vmem:[#allocation7 + $0x180] sm:$0xff]  ;;  %v824_v38 = vpack.c.bf16 %v442_v33, %v441_v32  ;;  %v426_v41 = vld [vmem:[#allocation7 + $0x8] sm:$0xff]  ;;  %v64_v48 = vld [vmem:[#allocation2 + $0x10] sm:$0xff] }
  0x4f   :  { %v856_v39 = vpack.c.bf16 %v474_v35, %v473_v34  ;;  %v425_v40 = vld [vmem:[#allocation7] sm:$0xff]  ;;  %v458_v43 = vld [vmem:[#allocation7 + $0x108] sm:$0xff]  ;;  %v443_v49 = vld [vmem:[#allocation7 + $0x90] sm:$0xff] }
  0x50   :  { %783 = vmatpush1.bf16.msra.mxu0 %v782_v12  ;;  %v457_v42 = vld [vmem:[#allocation7 + $0x100] sm:$0xff]  ;;  %v62_v44 = vld [vmem:[#allocation2] sm:$0xff]  ;;  %v826_v45 = vpack.c.bf16 %v426_v41, %v425_v40  ;;  %v444_v50 = vld [vmem:[#allocation7 + $0x98] sm:$0xff] }
  0x51   :  { %815 = vmatpush1.bf16.msra.mxu1 %v814_v13  ;;  %785 = vmatprep.subr.bf16.mxu0 %v784_v14  ;;  %v858_v46 = vpack.c.bf16 %v458_v43, %v457_v42  ;;  %v475_v51 = vld [vmem:[#allocation7 + $0x190] sm:$0xff]  ;;  %v828_v52 = vpack.c.bf16 %v444_v50, %v443_v49  ;;  %v476_v53 = vld [vmem:[#allocation7 + $0x198] sm:$0xff]  ;;  %v445_v61 = vld [vmem:[#allocation7 + $0xa0] sm:$0xff] }
  0x52   :  { %817 = vmatprep.subr.bf16.mxu1 %v816_v18  ;;  %v427_v54 = vld [vmem:[#allocation7 + $0x10] sm:$0xff]  ;;  %v428_v55 = vld [vmem:[#allocation7 + $0x18] sm:$0xff]  ;;  %v860_v56 = vpack.c.bf16 %v476_v53, %v475_v51  ;;  %v446_v62 = vld [vmem:[#allocation7 + $0xa8] sm:$0xff] }
  0x53   :  { %v830_v57 = vpack.c.bf16 %v428_v55, %v427_v54  ;;  %v459_v58 = vld [vmem:[#allocation7 + $0x110] sm:$0xff]  ;;  %v460_v59 = vld [vmem:[#allocation7 + $0x118] sm:$0xff]  ;;  %v832_v63 = vpack.c.bf16 %v446_v62, %v445_v61  ;;  %v478_v1 = vld [vmem:[#allocation7 + $0x1a8] sm:$0xff] }
  0x54   :  { %787 = vmatpush1.bf16.msra.mxu0 %v786_v24  ;;  %v862_v60 = vpack.c.bf16 %v460_v59, %v459_v58  ;;  %v429_v2 = vld [vmem:[#allocation7 + $0x20] sm:$0xff]  ;;  %v430_v3 = vld [vmem:[#allocation7 + $0x28] sm:$0xff]  ;;  %v447_v9 = vld [vmem:[#allocation7 + $0xb0] sm:$0xff] }
  0x55   :  { %819 = vmatpush1.bf16.msra.mxu1 %v818_v25  ;;  %789 = vmatprep.subr.bf16.mxu0 %v788_v26  ;;  %v834_v5 = vpack.c.bf16 %v430_v3, %v429_v2  ;;  %v461_v6 = vld [vmem:[#allocation7 + $0x120] sm:$0xff]  ;;  %v462_v7 = vld [vmem:[#allocation7 + $0x128] sm:$0xff]  ;;  %v448_v10 = vld [vmem:[#allocation7 + $0xb8] sm:$0xff] }
  0x56   :  { %821 = vmatprep.subr.bf16.mxu1 %v820_v30  ;;  %v866_v8 = vpack.c.bf16 %v462_v7, %v461_v6  ;;  %v479_v11 = vld [vmem:[#allocation7 + $0x1b0] sm:$0xff]  ;;  %v836_v12 = vpack.c.bf16 %v448_v10, %v447_v9  ;;  %v480_v13 = vld [vmem:[#allocation7 + $0x1b8] sm:$0xff]  ;;  %v449_v21 = vld [vmem:[#allocation7 + $0xc0] sm:$0xff] }
  0x57   :  { %v431_v14 = vld [vmem:[#allocation7 + $0x30] sm:$0xff]  ;;  %v432_v15 = vld [vmem:[#allocation7 + $0x38] sm:$0xff]  ;;  %v868_v16 = vpack.c.bf16 %v480_v13, %v479_v11  ;;  %v450_v22 = vld [vmem:[#allocation7 + $0xc8] sm:$0xff] }
  0x58   :  { %791 = vmatpush1.bf16.msra.mxu0 %v790_v36  ;;  %v838_v17 = vpack.c.bf16 %v432_v15, %v431_v14  ;;  %v463_v18 = vld [vmem:[#allocation7 + $0x130] sm:$0xff]  ;;  %v464_v19 = vld [vmem:[#allocation7 + $0x138] sm:$0xff]  ;;  %v481_v23 = vld [vmem:[#allocation7 + $0x1c0] sm:$0xff]  ;;  %v840_v24 = vpack.c.bf16 %v450_v22, %v449_v21 }
  0x59   :  { %823 = vmatpush1.bf16.msra.mxu1 %v822_v37  ;;  %825 = vmatprep.subr.bf16.mxu0 %v824_v38  ;;  %v870_v20 = vpack.c.bf16 %v464_v19, %v463_v18  ;;  %v482_v25 = vld [vmem:[#allocation7 + $0x1c8] sm:$0xff]  ;;  %v433_v26 = vld [vmem:[#allocation7 + $0x40] sm:$0xff]  ;;  %v451_v33 = vld [vmem:[#allocation7 + $0xd0] sm:$0xff] }
  0x5a   :  { %857 = vmatprep.subr.bf16.mxu1 %v856_v39  ;;  %v434_v27 = vld [vmem:[#allocation7 + $0x48] sm:$0xff]  ;;  %v872_v28 = vpack.c.bf16 %v482_v25, %v481_v23  ;;  %v465_v30 = vld [vmem:[#allocation7 + $0x140] sm:$0xff]  ;;  %v452_v34 = vld [vmem:[#allocation7 + $0xd8] sm:$0xff] }
  0x5b   :  { %216 = vmatmul.mubr.f32.vlgmr.msra.gmra.mrb[0].mxu0 %v62_v44  ;;  %v842_v29 = vpack.c.bf16 %v434_v27, %v433_v26  ;;  %v466_v31 = vld [vmem:[#allocation7 + $0x148] sm:$0xff]  ;;  %v483_v35 = vld [vmem:[#allocation7 + $0x1d0] sm:$0xff]  ;;  %v844_v36 = vpack.c.bf16 %v452_v34, %v451_v33  ;;  %v484_v37 = vld [vmem:[#allocation7 + $0x1d8] sm:$0xff] }
  0x5c   :  { %299 = vmatmul.mubr.f32.vlgmr.msra.gmra.mrb[0].mxu1 %v62_v44  ;;  %221 = vmatprep.mubr.f32.mxu0 %v1022_v0  ;;  %v874_v32 = vpack.c.bf16 %v466_v31, %v465_v30  ;;  %v435_v38 = vld [vmem:[#allocation7 + $0x50] sm:$0xff]  ;;  %v436_v39 = vld [vmem:[#allocation7 + $0x58] sm:$0xff]  ;;  %v876_v40 = vpack.c.bf16 %v484_v37, %v483_v35  ;;  %v453_v44 = vld [vmem:[#allocation7 + $0xe0] sm:$0xff] }
  0x5d   :  { %304 = vmatprep.mubr.f32.mxu1 %v1022_v0  ;;  %827 = vmatpush3.bf16.msra.mxu0 %v826_v45  ;;  %v846_v41 = vpack.c.bf16 %v436_v39, %v435_v38  ;;  %v467_v42 = vld [vmem:[#allocation7 + $0x150] sm:$0xff]  ;;  %v468_v43 = vld [vmem:[#allocation7 + $0x158] sm:$0xff]  ;;  %v437_v51 = vld [vmem:[#allocation7 + $0x60] sm:$0xff] }
  0x5e   :  { %859 = vmatpush3.bf16.msra.mxu1 %v858_v46  ;;  %829 = vmatprep.subr.bf16.mxu0 %v828_v52  ;;  %v878_v45 = vpack.c.bf16 %v468_v43, %v467_v42  ;;  %v454_v46 = vld [vmem:[#allocation7 + $0xe8] sm:$0xff]  ;;  %v469_v53 = vld [vmem:[#allocation7 + $0x160] sm:$0xff]  ;;  %v488_v61 = vld [vmem:[#allocation7 + $0x1f8] sm:$0xff] }
  0x5f   :  { %222 = vmatmul.mubr.f32.gmra.mrb[2].mxu0 %v63_v47  ;;  %861 = vmatprep.subr.bf16.mxu1 %v860_v56  ;;  %v848_v49 = vpack.c.bf16 %v454_v46, %v453_v44  ;;  %v438_v52 = vld [vmem:[#allocation7 + $0x68] sm:$0xff]  ;;  %v455_v56 = vld [vmem:[#allocation7 + $0xf0] sm:$0xff]  ;;  %v472_v2 = vld [vmem:[#allocation7 + $0x178] sm:$0xff] }
  0x60   :  { %305 = vmatmul.mubr.f32.gmra.mrb[2].mxu1 %v63_v47  ;;  %227 = vmatprep.mubr.f32.mxu0 %v1022_v0  ;;  %v485_v47 = vld [vmem:[#allocation7 + $0x1e0] sm:$0xff]  ;;  %v850_v54 = vpack.c.bf16 %v438_v52, %v437_v51  ;;  %v470_v55 = vld [vmem:[#allocation7 + $0x168] sm:$0xff]  ;;  %v439_v62 = vld [vmem:[#allocation7 + $0x70] sm:$0xff] }
  0x61   :  { %310 = vmatprep.mubr.f32.mxu1 %v1022_v0  ;;  %831 = vmatpush3.bf16.msra.mxu0 %v830_v57  ;;  %v477_v0 = vld [vmem:[#allocation7 + $0x1a0] sm:$0xff]  ;;  %v456_v57 = vld [vmem:[#allocation7 + $0xf8] sm:$0xff]  ;;  %v882_v58 = vpack.c.bf16 %v470_v55, %v469_v53 }
  0x62   :  { %863 = vmatpush3.bf16.msra.mxu1 %v862_v60  ;;  %v864_v4 = vpack.c.bf16 %v478_v1, %v477_v0  ;;  %833 = vmatprep.subr.bf16.mxu0 %v832_v63  ;;  %v852_v59 = vpack.c.bf16 %v456_v57, %v455_v56  ;;  %v487_v60 = vld [vmem:[#allocation7 + $0x1f0] sm:$0xff]  ;;  %v440_v63 = vld [vmem:[#allocation7 + $0x78] sm:$0xff] }
  0x63   :  { %228 = vmatmul.mubr.f32.gmra.mrb[4].mxu0 %v64_v48  ;;  %v884_v0 = vpack.c.bf16 %v488_v61, %v487_v60  ;;  %v471_v1 = vld [vmem:[#allocation7 + $0x170] sm:$0xff]  ;;  %v854_v3 = vpack.c.bf16 %v440_v63, %v439_v62 }
  0x64   :  { %311 = vmatmul.mubr.f32.gmra.mrb[4].mxu1 %v64_v48  ;;  %865 = vmatprep.subr.bf16.mxu1 %v864_v4  ;;  %v486_v48 = vld [vmem:[#allocation7 + $0x1e8] sm:$0xff]  ;;  %v886_v4 = vpack.c.bf16 %v472_v2, %v471_v1 }
  0x65   :  { %835 = vmatpush3.bf16.msra.mxu0 %v834_v5  ;;  %v880_v50 = vpack.c.bf16 %v486_v48, %v485_v47  ;;  %v131_v5 = vlaneseq }
  0x66   :  { %867 = vmatpush3.bf16.msra.mxu1 %v866_v8  ;;  %837 = vmatprep.subr.bf16.mxu0 %v836_v12  ;;  %v129_v8 = vld [vmem:[%s1209_s2] sm:$0xf] }
  0x67   :  { %869 = vmatprep.subr.bf16.mxu1 %v868_v16  ;;  %v132_v6 = vshrl.u32 %v131_v5, 7 }
  0x69   :  { %839 = vmatpush3.bf16.msra.mxu0 %v838_v17  ;;  %v133_v7 = vsub.s32 0, %v132_v6  ;;  %v141_v9 = vsub.s32 2, %v132_v6  ;;  %v137_v10 = vsub.s32 1, %v132_v6  ;;  %v145_v11 = vsub.s32 3, %v132_v6 }
  0x6a   :  { %871 = vmatpush3.bf16.msra.mxu1 %v870_v20  ;;  %841 = vmatprep.subr.bf16.mxu0 %v840_v24 }
  0x6b   :  { %873 = vmatprep.subr.bf16.mxu1 %v872_v28  ;;  %v134_v12 = vrot.slane %v129_v8, %v133_v7  ;;  %v142_v13 = vrot.slane %v129_v8, %v141_v9  ;;  %v138_v14 = vrot.slane %v129_v8, %v137_v10  ;;  %v146_v15 = vrot.slane %v129_v8, %v145_v11 }
  0x6d   :  { %843 = vmatpush3.bf16.msra.mxu0 %v842_v29 }
  0x6e   :  { %875 = vmatpush3.bf16.msra.mxu1 %v874_v32  ;;  %845 = vmatprep.subr.bf16.mxu0 %v844_v36 }
  0x6f   :  { %877 = vmatprep.subr.bf16.mxu1 %v876_v40 }
  0x71   :  { %847 = vmatpush3.bf16.msra.mxu0 %v846_v41 }
  0x72   :  { %879 = vmatpush3.bf16.msra.mxu1 %v878_v45  ;;  %849 = vmatprep.subr.bf16.mxu0 %v848_v49 }
  0x73   :  { %881 = vmatprep.subr.bf16.mxu1 %v880_v50 }
  0x75   :  { %851 = vmatpush3.bf16.msra.mxu0 %v850_v54 }
  0x76   :  { %883 = vmatpush3.bf16.msra.mxu1 %v882_v58  ;;  %853 = vmatprep.subr.bf16.mxu0 %v852_v59 }
  0x77   :  { %885 = vmatprep.subr.bf16.mxu1 %v884_v0 }
  0x79   :  { %855 = vmatpush3.bf16.msra.mxu0 %v854_v3 }
  0x7a   :  { %887 = vmatpush3.bf16.msra.mxu1 %v886_v4 }
 0x12e   :  { %v217_v16 = vpop.f32.mrb[0].mxu0 }
 0x12f   :  { %v1105_v17 = vadd.f32 %v217_v16, %v134_v12  ;;  %v300_v18 = vpop.f32.mrb[0].mxu1  ;;  %v219_v19 = vpop.f32.mrb[1].mxu0 }
 0x130   :  { %v1107_v20 = vadd.f32 %v300_v18, %v142_v13  ;;  %v1109_v21 = vadd.f32 %v219_v19, %v138_v14  ;;  %v302_v22 = vpop.f32.mrb[1].mxu1 }
 0x131   :  { %v329_v23 = vmul.f32 0.044715, %v1105_v17  ;;  %v1112_v24 = vadd.f32 %v302_v22, %v146_v15 }
 0x132   :  { %v331_v25 = vmul.f32 0.044715, %v1107_v20  ;;  %v330_v26 = vmul.f32 0.044715, %v1109_v21  ;;  %v223_v27 = vpop.f32.mrb[2].mxu0 }
 0x133   :  { %v341_v28 = vmul.f32 %v329_v23, %v1105_v17  ;;  %v1117_v29 = vadd.f32 %v223_v27, %v134_v12  ;;  %v306_v30 = vpop.f32.mrb[2].mxu1  ;;  %v225_v31 = vpop.f32.mrb[3].mxu0  ;;  %v332_v38 = vmul.f32 0.044715, %v1112_v24 }
 0x134   :  { %v343_v32 = vmul.f32 %v331_v25, %v1107_v20  ;;  %v342_v33 = vmul.f32 %v330_v26, %v1109_v21  ;;  %v1121_v34 = vadd.f32 %v306_v30, %v142_v13  ;;  %v1123_v35 = vadd.f32 %v225_v31, %v138_v14  ;;  %v308_v36 = vpop.f32.mrb[3].mxu1 }
 0x135   :  { %v353_v37 = vmul.f32 %v341_v28, %v1105_v17  ;;  %v1127_v39 = vadd.f32 %v308_v36, %v146_v15  ;;  %v333_v41 = vmul.f32 0.044715, %v1117_v29  ;;  %v344_v55 = vmul.f32 %v332_v38, %v1112_v24 }
 0x136   :  { %v355_v40 = vmul.f32 %v343_v32, %v1107_v20  ;;  %v334_v42 = vmul.f32 0.044715, %v1123_v35  ;;  %v229_v43 = vpop.f32.mrb[4].mxu0  ;;  %v354_v44 = vmul.f32 %v342_v33, %v1109_v21  ;;  %v335_v51 = vmul.f32 0.044715, %v1121_v34 }
 0x137   :  { %v365_v45 = vadd.f32 %v353_v37, %v1105_v17  ;;  %v336_v46 = vmul.f32 0.044715, %v1127_v39  ;;  %v1135_v47 = vadd.f32 %v229_v43, %v134_v12  ;;  %v312_v48 = vpop.f32.mrb[4].mxu1  ;;  %v231_v49 = vpop.f32.mrb[5].mxu0  ;;  %v345_v58 = vmul.f32 %v333_v41, %v1117_v29 }
 0x138   :  { %v367_v50 = vadd.f32 %v355_v40, %v1107_v20  ;;  %v1139_v52 = vadd.f32 %v312_v48, %v142_v13  ;;  %v314_v53 = vpop.f32.mrb[5].mxu1  ;;  %v346_v56 = vmul.f32 %v334_v42, %v1123_v35  ;;  %v1143_v57 = vadd.f32 %v231_v49, %v138_v14 }
 0x139   :  { %v377_v54 = vmul.f32 0.7978846, %v365_v45  ;;  %v348_v59 = vmul.f32 %v336_v46, %v1127_v39  ;;  %v1147_v60 = vadd.f32 %v314_v53, %v146_v15  ;;  %v366_v61 = vadd.f32 %v354_v44, %v1109_v21 }
 0x13a   :  { %v379_v62 = vmul.f32 0.7978846, %v367_v50  ;;  %v337_v0 = vmul.f32 0.044715, %v1135_v47  ;;  %v338_v63 = vmul.f32 0.044715, %v1143_v57  ;;  %v347_v1 = vmul.f32 %v335_v51, %v1121_v34 }
 0x13b   :  { %897 = vtanh.f32 %v377_v54  ;;  %v339_v2 = vmul.f32 0.044715, %v1139_v52  ;;  %v340_v3 = vmul.f32 0.044715, %v1147_v60  ;;  %v378_v4 = vmul.f32 0.7978846, %v366_v61 }
 0x13c   :  { %v350_v5 = vmul.f32 %v338_v63, %v1143_v57  ;;  %v356_v6 = vmul.f32 %v344_v55, %v1112_v24  ;;  %v358_v7 = vmul.f32 %v346_v56, %v1123_v35  ;;  %v360_v9 = vmul.f32 %v348_v59, %v1127_v39 }
 0x13d   :  { %v352_v8 = vmul.f32 %v340_v3, %v1147_v60  ;;  %899 = vtanh.f32 %v378_v4  ;;  %v349_v10 = vmul.f32 %v337_v0, %v1135_v47  ;;  %v357_v13 = vmul.f32 %v345_v58, %v1117_v29 }
 0x13e   :  { %v368_v11 = vadd.f32 %v356_v6, %v1112_v24  ;;  %v370_v12 = vadd.f32 %v358_v7, %v1123_v35  ;;  %901 = vtanh.f32 %v379_v62  ;;  %v351_v14 = vmul.f32 %v339_v2, %v1139_v52 }
 0x13f   :  { %v372_v15 = vadd.f32 %v360_v9, %v1127_v39  ;;  %v359_v16 = vmul.f32 %v347_v1, %v1121_v34  ;;  %v369_v22 = vadd.f32 %v357_v13, %v1117_v29  ;;  %v362_v23 = vmul.f32 %v350_v5, %v1143_v57 }
 0x140   :  { %v380_v18 = vmul.f32 0.7978846, %v368_v11  ;;  %v382_v19 = vmul.f32 0.7978846, %v370_v12  ;;  %v364_v27 = vmul.f32 %v352_v8, %v1147_v60  ;;  %v361_v33 = vmul.f32 %v349_v10, %v1135_v47 }
 0x141   :  { %v384_v25 = vmul.f32 0.7978846, %v372_v15  ;;  %v371_v26 = vadd.f32 %v359_v16, %v1121_v34  ;;  %v381_v28 = vmul.f32 0.7978846, %v369_v22  ;;  %v374_v30 = vadd.f32 %v362_v23, %v1143_v57 }
 0x142   :  { %903 = vtanh.f32 %v380_v18  ;;  %v376_v32 = vadd.f32 %v364_v27, %v1147_v60  ;;  %v363_v38 = vmul.f32 %v351_v14, %v1139_v52  ;;  %v373_v41 = vadd.f32 %v361_v33, %v1135_v47 }
 0x143   :  { %905 = vtanh.f32 %v382_v19  ;;  %v383_v31 = vmul.f32 0.7978846, %v371_v26  ;;  %v386_v37 = vmul.f32 0.7978846, %v374_v30  ;;  %v318_v46 = vmul.f32 0.5, %v1109_v21 }
 0x144   :  { %907 = vtanh.f32 %v384_v25  ;;  %v388_v40 = vmul.f32 0.7978846, %v376_v32  ;;  %v375_v42 = vadd.f32 %v363_v38, %v1139_v52  ;;  %v385_v45 = vmul.f32 0.7978846, %v373_v41 }
 0x145   :  { %v898_v36 = vpop.eup %897  ;;  %909 = vtanh.f32 %v381_v28  ;;  %v317_v51 = vmul.f32 0.5, %v1105_v17  ;;  %v320_v59 = vmul.f32 0.5, %v1112_v24  ;;  %v319_v21 = vmul.f32 0.5, %v1107_v20  ;;  %v677_v28 = vld [vmem:[%s1211_s4] ss:$0 sm:$0xff]  ;;  %s1023_s4 = smov [#allocation8]  }
 0x146   :  { %911 = vtanh.f32 %v383_v31  ;;  %v401_v44 = vadd.f32 1.0, %v898_v36  ;;  %v387_v49 = vmul.f32 0.7978846, %v375_v42  ;;  %v322_v0 = vmul.f32 0.5, %v1123_v35  ;;  %s664_s8 = sshll.u32 %s1023_s4, 4  ;;  %s665_s8 = int_to_ptr.vmem [resolvable:$true] %s664_s8 }
 0x147   :  { %v900_v43 = vpop.eup %899  ;;  %913 = vtanh.f32 %v386_v37  ;;  %v324_v2 = vmul.f32 0.5, %v1127_v39  ;;  %v321_v7 = vmul.f32 0.5, %v1117_v29  ;;  %v323_v35 = vmul.f32 0.5, %v1121_v34  ;;  %s987_s9 = scalar_lea.vmem %s665_s8, 384  ;;  %p992_p11 = scmp.lt.s32.totalorder %s665_s8, %s665_s8 }
 0x148   :  { %v402_v48 = vadd.f32 1.0, %v900_v43  ;;  %915 = vtanh.f32 %v388_v40  ;;  %v902_v50 = vpop.eup %901  ;;  %v413_v54 = vmul.f32 %v401_v44, %v317_v51  ;;  %v326_v12 = vmul.f32 0.5, %v1143_v57  ;;  %p988_p10 = scmp.ne.s32.totalorder %s665_s8, %s987_s9  ;;  %p993_p12 = scmp.lt.s32.totalorder %s987_s9, %s987_s9 }
 0x149   :  { %917 = vtanh.f32 %v385_v45  ;;  %v403_v56 = vadd.f32 1.0, %v902_v50  ;;  %v328_v14 = vmul.f32 0.5, %v1147_v60  ;;  %v325_v19 = vmul.f32 0.5, %v1135_v47 }
 0x14a   :  { %v414_v53 = vmul.f32 %v402_v48, %v318_v46  ;;  %919 = vtanh.f32 %v387_v49  ;;  %v327_v57 = vmul.f32 0.5, %v1139_v52  ;;  %p994_p13 = por %p993_p12, %p992_p11 }
 0x14b   :  { %v415_v5 = vmul.f32 %v403_v56, %v319_v21 }
 0x14c   :  { %v904_v55 = vpop.eup %903  ;;  %560 = vmatprep.mubr.f32.mxu0 %v414_v53  ;;  %p995_p0 = pnand %p994_p13, %p988_p10 }
 0x14d   :  { %v906_v58 = vpop.eup %905  ;;  %v404_v61 = vadd.f32 1.0, %v904_v55  ;;  %561 = vmatmul.mubr.f32.vlgmr.msra.gmra.mrb[6].mxu0 %v413_v54 }
 0x14e   :  { %v908_v62 = vpop.eup %907  ;;  %v406_v63 = vadd.f32 1.0, %v906_v58 }
 0x14f   :  { %v910_v1 = vpop.eup %909  ;;  %v416_v17 = vmul.f32 %v404_v61, %v320_v59  ;;  %v408_v3 = vadd.f32 1.0, %v908_v62 }
 0x150   :  { %v912_v4 = vpop.eup %911  ;;  %v418_v6 = vmul.f32 %v406_v63, %v322_v0  ;;  %v405_v8 = vadd.f32 1.0, %v910_v1 }
 0x151   :  { %v914_v24 = vpop.eup %913  ;;  %640 = vmatprep.mubr.f32.mxu1 %v416_v17  ;;  %v420_v9 = vmul.f32 %v408_v3, %v324_v2  ;;  %v407_v10 = vadd.f32 1.0, %v912_v4 }
 0x152   :  { %v916_v11 = vpop.eup %915  ;;  %641 = vmatmul.mubr.f32.vlgmr.msra.gmra.mrb[6].mxu1 %v415_v5  ;;  %565 = vmatprep.mubr.f32.mxu0 %v418_v6  ;;  %v417_v20 = vmul.f32 %v405_v8, %v321_v7  ;;  %v410_v39 = vadd.f32 1.0, %v914_v24 }
 0x153   :  { %v918_v13 = vpop.eup %917  ;;  %645 = vmatprep.mubr.f32.mxu1 %v420_v9  ;;  %v412_v15 = vadd.f32 1.0, %v916_v11  ;;  %v419_v16 = vmul.f32 %v407_v10, %v323_v35 }
 0x154   :  { %v920_v29 = vpop.eup %919  ;;  %566 = vmatmul.mubr.f32.gmra.mrb[8].mxu0 %v417_v20  ;;  %v422_v18 = vmul.f32 %v410_v39, %v326_v12  ;;  %v409_v22 = vadd.f32 1.0, %v918_v13 }
 0x155   :  { %v424_v23 = vmul.f32 %v412_v15, %v328_v14  ;;  %v411_v25 = vadd.f32 1.0, %v920_v29 }
 0x156   :  { %646 = vmatmul.mubr.f32.gmra.mrb[8].mxu1 %v419_v16  ;;  %570 = vmatprep.mubr.f32.mxu0 %v422_v18  ;;  %v421_v34 = vmul.f32 %v409_v22, %v325_v19 }
 0x157   :  { %650 = vmatprep.mubr.f32.mxu1 %v424_v23  ;;  %v423_v26 = vmul.f32 %v411_v25, %v327_v57 }
 0x158   :  { %571 = vmatmul.mubr.f32.gmra.mrb[10].mxu0 %v421_v34 }
 0x15a   :  { %651 = vmatmul.mubr.f32.gmra.mrb[10].mxu1 %v423_v26 }
 0x220   :  { %v710_v60 = vpop.f32.mrb[6].mxu0 }
 0x221   :  { %v711_v27 = vpop.f32.mrb[7].mxu0 }
 0x222   :  { %v712_v30 = vadd.f32 %v711_v27, %v710_v60 }
 0x224   :  { %v563_v31 = vadd.f32 %v712_v30, %v677_v28 }
 0x225   :  { %v751_v47 = vpop.f32.mrb[6].mxu1 }
 0x226   :  { %v752_v32 = vpop.f32.mrb[7].mxu1 }
 0x227   :  { %v753_v33 = vadd.f32 %v752_v32, %v751_v47  ;;  %v713_v36 = vpop.f32.mrb[8].mxu0 }
 0x228   :  { %v714_v37 = vpop.f32.mrb[9].mxu0 }
 0x229   :  { %v643_v38 = vadd.f32 %v753_v33, %v563_v31  ;;  %v754_v40 = vpop.f32.mrb[8].mxu1  ;;  %v715_v52 = vadd.f32 %v714_v37, %v713_v36 }
 0x22a   :  { %v755_v41 = vpop.f32.mrb[9].mxu1 }
 0x22b   :  { %656 = vst [vmem:[#allocation8] sm:$0xff] %v643_v38  ;;  %v568_v42 = vadd.f32 %v715_v52, %v677_v28  ;;  %v756_v43 = vadd.f32 %v755_v41, %v754_v40  ;;  %v716_v44 = vpop.f32.mrb[10].mxu0 }
 0x22c   :  { %v717_v45 = vpop.f32.mrb[11].mxu0 }
 0x22d   :  { %v648_v46 = vadd.f32 %v756_v43, %v568_v42  ;;  %v757_v48 = vpop.f32.mrb[10].mxu1  ;;  %v718_v49 = vadd.f32 %v717_v45, %v716_v44 }
 0x22e   :  { %v758_v50 = vpop.f32.mrb[11].mxu1 }
 0x22f   :  { %657 = vst [vmem:[#allocation8 + $0x8] sm:$0xff] %v648_v46  ;;  %v573_v51 = vadd.f32 %v718_v49, %v677_v28  ;;  %v759_v53 = vadd.f32 %v758_v50, %v757_v48 }
 0x231   :  { %v653_v54 = vadd.f32 %v759_v53, %v573_v51 }
 0x233   :  { %658 = vst [vmem:[#allocation8 + $0x10] sm:$0xff] %v653_v54 }
 0x234   :  { %998 = shalt.err (!%p995_p0)
}
 0x235   :  { %s999_s12 = scalar_lea.hbm %s1212_s5, 384 }
 0x236   :  { %p1000_p1 = scmp.ne.s32.totalorder %s1212_s5, %s999_s12  ;;  %p1003_p2 = scmp.lt.u32.totalorder %s999_s12, %s1212_s5 }
 0x238   :  { %p1005_p3 = pnand %p1003_p2, %p1000_p1 }
 0x23a   :  { %1008 = shalt.err (!%p1005_p3)
}
 0x23b   :  { %670 = dma.vmem_to_hbm [thread:$0]  %s665_s8, 384, %s1212_s5, [#allocation4], %s1019_s1, %s1019_s1, %s1020_s17  }
 0x23c   :  { %1013 = dma.done.wait [#allocation4], 384  }
 0x23d   :  { %1014 = vsyncadd [#allocation4], 4294966912 }
 0x23e   :  { %674 = vsyncpa [#allocation3], 1 }
 0x23f   :  { %675 = vsyncpa [#allocation6], 1 }
 0x240   :  { %676 = vsyncpa [#allocation4], 1 }

</bundles_post_ra>
